<compile_context>
chip_gen: v6e
topology: v6e:2x2x1
jax: 0.10.0
libtpu: 0.0.40
codegen_flags: <defaults>
</compile_context>

<pallas_src>
import jax
import jax.numpy as jnp
from jax import lax
from jax.experimental import pallas as pl
from jax.experimental.pallas import tpu as pltpu


# Contract the feature axis of both operands: x(B,D) . w(N,D) -> (B,N)  (trans_b)
_TRANS_B = (((1,), (1,)), ((), ()))


def skipgram_kernel(x_ref, w_ref, b_ref, o_ref):
    # x_ref : (TM, D) bf16   w_ref : (N, D) bf16   b_ref : (1, N) f32   o_ref : (TM, N) f32
    x = x_ref[...]
    w = w_ref[...]
    b = b_ref[...]

    # v = Linear(x) -> (TM, N), f32 accumulation on the MXU.
    v = lax.dot_general(x, w, dimension_numbers=_TRANS_B,
                        preferred_element_type=jnp.float32) + b
    # z = Linear(v) -> (TM, N)   (requires N == D, enforced by wrapper)
    z = lax.dot_general(v.astype(w.dtype), w, dimension_numbers=_TRANS_B,
                        preferred_element_type=jnp.float32) + b

    # Numerically-stable softmax over dim=1 (feature axis), f32 throughout.
    z = z - jnp.max(z, axis=1, keepdims=True)
    e = jnp.exp(z)
    denom = jnp.sum(e, axis=1, keepdims=True)
    o_ref[...] = (e * pl.reciprocal(denom, approx=True)).astype(o_ref.dtype)


def skipgram_forward(x, w, b, *, tm=128):
    """x: (B, emb_dim) f32, w: (num_words, emb_dim) f32 (PyTorch Linear layout),
    b: (num_words,) f32. Returns softmax(Linear(Linear(x)), axis=1), (B, num_words) f32."""
    B, D = x.shape
    N, D_in = w.shape
    assert D == D_in, "input feature dim must match Linear in_features"
    assert N == D, "num_words must equal emb_dim for encoder(encoder(x)) to be valid"

    # Pad the batch to a full MXU-row tile (rows are independent; extras sliced off).
    Bp = max(tm, ((B + tm - 1) // tm) * tm)
    if Bp != B:
        x = jnp.pad(x, ((0, Bp - B), (0, 0)))

    # bf16 operands for the MXU (f32 accumulate inside the kernel); bias stays f32.
    x_bf = x.astype(jnp.bfloat16)
    w_bf = w.astype(jnp.bfloat16)
    b2 = b.reshape(1, N).astype(jnp.float32)

    grid = (Bp // tm,)

    cost = pl.CostEstimate(
        flops=2 * 2 * Bp * D * N,                       # two GEMMs
        transcendentals=Bp * N + Bp,                    # exp per element + recip per row
        bytes_accessed=Bp * D * 2 + N * D * 2 + N * 4 + Bp * N * 4,
    )

    y = pl.pallas_call(
        skipgram_kernel,
        out_shape=jax.ShapeDtypeStruct((Bp, N), jnp.float32),
        grid=grid,
        in_specs=[
            pl.BlockSpec((tm, D), lambda i: (i, 0)),     # batch tile streams
            pl.BlockSpec((N, D), lambda i: (0, 0)),      # weight resident in VMEM
            pl.BlockSpec((1, N), lambda i: (0, 0)),      # bias resident in VMEM
        ],
        out_specs=pl.BlockSpec((tm, N), lambda i: (i, 0)),
        compiler_params=pltpu.CompilerParams(
            dimension_semantics=("parallel",)),          # batch grid shards over TCs (v7x)
        cost_estimate=cost,
    )(x_bf, w_bf, b2)

    return y[:B]


if __name__ == "__main__":
    # Small, deterministic setup.  num_words == emb_dim is required (see note).
    num_words = 128
    emb_dim = 128
    batch = 8

    key = jax.random.PRNGKey(0)
    kx, kw, kb = jax.random.split(key, 3)

    # Deterministic "Linear" parameters (synthetic init, PyTorch Linear shapes).
    w = jax.random.uniform(kw, (num_words, emb_dim), jnp.float32,
                           minval=-0.08, maxval=0.08)   # (out_features, in_features)
    b = jax.random.uniform(kb, (num_words,), jnp.float32, minval=-0.08, maxval=0.08)

    # center_word input: (batch, emb_dim) float features.
    x = jax.random.normal(kx, (batch, emb_dim), jnp.float32)

    y = skipgram_forward(x, w, b)
    y = jax.block_until_ready(y)

    # Reference mirroring the kernel's bf16-operand / f32-accumulate math.
    dn = (((1,), (1,)), ((), ()))
    x_bf, w_bf = x.astype(jnp.bfloat16), w.astype(jnp.bfloat16)
    v_ref = lax.dot_general(x_bf, w_bf, dn, preferred_element_type=jnp.float32) + b
    z_ref = lax.dot_general(v_ref.astype(jnp.bfloat16), w_bf, dn,
                            preferred_element_type=jnp.float32) + b
    y_ref = jax.nn.softmax(z_ref, axis=1)

    assert y.shape == (batch, num_words)
    assert bool(jnp.all(jnp.isfinite(y)))
    assert jnp.allclose(y, y_ref, atol=2e-3, rtol=2e-3)        # bf16 MXU + approx recip
    assert jnp.allclose(jnp.sum(y, axis=1), 1.0, atol=1e-2)    # rows are (near-)normalized

    print("KERNEL_OK")
</pallas_src>

<mosaic_0001>
module attributes {stable_mosaic.version = 11 : i64} {
  func.func @skipgram_kernel(%arg0: i32, %arg1: memref<128x128xbf16, #tpu.memory_space<vmem>>, %arg2: memref<128x128xbf16, #tpu.memory_space<vmem>>, %arg3: memref<1x128xf32, #tpu.memory_space<vmem>>, %arg4: memref<128x128xf32, #tpu.memory_space<vmem>>) attributes {dimension_semantics = [#tpu.dimension_semantics<parallel>], iteration_bounds = array<i64: 1>, scalar_prefetch = 0 : i64, scratch_operands = 0 : i64, tpu.core_type = #tpu.core_type<tc>, window_params = [{transform_indices = @transform_0, window_bounds = array<i64: 128, 128>}, {pipeline_mode = #tpu.pipeline_mode<synchronous>, transform_indices = @transform_1, window_bounds = array<i64: 128, 128>}, {pipeline_mode = #tpu.pipeline_mode<synchronous>, transform_indices = @transform_2, window_bounds = array<i64: 1, 128>}, {transform_indices = @transform_3, window_bounds = array<i64: 128, 128>}]} {
    %c0 = arith.constant 0 : index
    %c0_0 = arith.constant 0 : index
    %0 = vector.load %arg1[%c0, %c0_0] : memref<128x128xbf16, #tpu.memory_space<vmem>>, vector<128x128xbf16>
    %c0_1 = arith.constant 0 : index
    %c0_2 = arith.constant 0 : index
    %1 = vector.load %arg2[%c0_1, %c0_2] : memref<128x128xbf16, #tpu.memory_space<vmem>>, vector<128x128xbf16>
    %c0_3 = arith.constant 0 : index
    %c0_4 = arith.constant 0 : index
    %2 = vector.load %arg3[%c0_3, %c0_4] : memref<1x128xf32, #tpu.memory_space<vmem>>, vector<1x128xf32>
    %cst = arith.constant dense<0.000000e+00> : vector<128x128xf32>
    %3 = tpu.matmul %0, %1, %cst {dimension_numbers = #tpu.dot_dimension_numbers<[1], [1], [0], [0], [0, 0, 1, 0], [], []>} : vector<128x128xbf16>, vector<128x128xbf16>, vector<128x128xf32> -> vector<128x128xf32>
    %4 = vector.broadcast %2 : vector<1x128xf32> to vector<128x128xf32>
    %5 = arith.addf %3, %4 : vector<128x128xf32>
    %6 = arith.truncf %5 : vector<128x128xf32> to vector<128x128xbf16>
    %cst_5 = arith.constant dense<0.000000e+00> : vector<128x128xf32>
    %7 = tpu.matmul %6, %1, %cst_5 {dimension_numbers = #tpu.dot_dimension_numbers<[1], [1], [0], [0], [0, 0, 1, 0], [], []>} : vector<128x128xbf16>, vector<128x128xbf16>, vector<128x128xf32> -> vector<128x128xf32>
    %8 = vector.broadcast %2 : vector<1x128xf32> to vector<128x128xf32>
    %9 = arith.addf %7, %8 : vector<128x128xf32>
    %cst_6 = arith.constant dense<0xFF800000> : vector<128xf32>
    %10 = vector.multi_reduction <maximumf>, %9, %cst_6 [1] : vector<128x128xf32> to vector<128xf32>
    %11 = vector.shape_cast %10 : vector<128xf32> to vector<128x1xf32>
    %12 = vector.broadcast %11 : vector<128x1xf32> to vector<128x128xf32>
    %13 = arith.subf %9, %12 : vector<128x128xf32>
    %14 = math.exp %13 : vector<128x128xf32>
    %cst_7 = arith.constant dense<0.000000e+00> : vector<128xf32>
    %15 = vector.multi_reduction <add>, %14, %cst_7 [1] : vector<128x128xf32> to vector<128xf32>
    %16 = vector.shape_cast %15 : vector<128xf32> to vector<128x1xf32>
    %17 = tpu.reciprocal %16 {approx = true} : vector<128x1xf32> -> vector<128x1xf32>
    %18 = vector.broadcast %17 : vector<128x1xf32> to vector<128x128xf32>
    %19 = arith.mulf %14, %18 : vector<128x128xf32>
    %c0_8 = arith.constant 0 : index
    %c0_9 = arith.constant 0 : index
    %20 = vector.load %arg4[%c0_8, %c0_9] : memref<128x128xf32, #tpu.memory_space<vmem>>, vector<128x128xf32>
    tpu.vector_store %arg4[%c0_8, %c0_9], %19 {strides = array<i32>} : memref<128x128xf32, #tpu.memory_space<vmem>>, vector<128x128xf32>,
    return
  }
  func.func @transform_0(%arg0: i32) -> (i32, i32) {
    %c0_i32 = arith.constant 0 : i32
    %c0_i32_0 = arith.constant 0 : i32
    return %arg0, %c0_i32 : i32, i32
  }
  func.func @transform_1(%arg0: i32) -> (i32, i32) {
    %c0_i32 = arith.constant 0 : i32
    %c0_i32_0 = arith.constant 0 : i32
    %c0_i32_1 = arith.constant 0 : i32
    return %c0_i32, %c0_i32_0 : i32, i32
  }
  func.func @transform_2(%arg0: i32) -> (i32, i32) {
    %c0_i32 = arith.constant 0 : i32
    %c0_i32_0 = arith.constant 0 : i32
    %c0_i32_1 = arith.constant 0 : i32
    return %c0_i32, %c0_i32_0 : i32, i32
  }
  func.func @transform_3(%arg0: i32) -> (i32, i32) {
    %c0_i32 = arith.constant 0 : i32
    %c0_i32_0 = arith.constant 0 : i32
    return %arg0, %c0_i32 : i32, i32
  }
}

</mosaic_0001>

<bundles_post_ra>
// kernel: tpu_custom_call.1
= control target key start
LH: loop header
LB: loop body
LE: loop exit
PB: predicated region body
PF: predicated region fallthrough
CT: control target
= control target key end

     0   :  { %8 = vsyncpa [#allocation3], 0  ;;  %s990_s0 = inlined_call_operand.hbm [shape: bf16[128,128], index: 0, kind: input, shape index: {}]   ;;  %s991_s1 = inlined_call_operand.hbm [shape: bf16[128,128], index: 1, kind: input, shape index: {}]   ;;  %s992_s2 = inlined_call_operand.vmem [shape: f32[1,128], index: 2, kind: input, shape index: {}]   ;;  %s993_s3 = inlined_call_operand.hbm [shape: f32[128,128], index: 3, kind: output, shape index: {}]  }
   0x1   :  { %9 = vsyncpa [#allocation6], 0 }
   0x2   :  { %10 = vsyncpa [#allocation4], 0  ;;  %s825_s12 = smov [#allocation2]  }
   0x3   :  { %s16_s13 = sshll.u32 %s825_s12, 4  ;;  %s17_s13 = int_to_ptr.vmem [resolvable:$true] %s16_s13 }
   0x4   :  { %s767_s14 = scalar_lea.vmem %s17_s13, 1024  ;;  %p772_p1 = scmp.lt.s32.totalorder %s17_s13, %s17_s13 }
   0x5   :  { %p768_p0 = scmp.ne.s32.totalorder %s17_s13, %s767_s14  ;;  %p773_p2 = scmp.lt.s32.totalorder %s767_s14, %s767_s14 }
   0x7   :  { %p774_p3 = por %p773_p2, %p772_p1 }
   0x9   :  { %p775_p4 = pnand %p774_p3, %p768_p0 }
   0xb   :  { %778 = shalt.err (!%p775_p4)
}
   0xc   :  { %s826_s15 = smov 64   ;;  %s827_s16 = smov 4  }
   0xd   :  { %22 = dma.hbm_to_vmem [thread:$0]  %s990_s0, 1024, %s17_s13, [#allocation3], %s826_s15, %s826_s15, %s827_s16  }
   0xe   :  { %s828_s19 = smov [#allocation5]  }
   0xf   :  { %s28_s20 = sshll.u32 %s828_s19, 4  ;;  %s29_s20 = int_to_ptr.vmem [resolvable:$true] %s28_s20 }
  0x10   :  { %s787_s21 = scalar_lea.vmem %s29_s20, 1024  ;;  %p792_p6 = scmp.lt.s32.totalorder %s29_s20, %s29_s20 }
  0x11   :  { %p788_p5 = scmp.ne.s32.totalorder %s29_s20, %s787_s21  ;;  %p793_p7 = scmp.lt.s32.totalorder %s787_s21, %s787_s21 }
  0x13   :  { %p794_p8 = por %p793_p7, %p792_p6 }
  0x15   :  { %p795_p9 = pnand %p794_p8, %p788_p5 }
  0x17   :  { %798 = shalt.err (!%p795_p9)
}
  0x18   :  { %34 = dma.hbm_to_vmem [thread:$0]  %s991_s1, 1024, %s29_s20, [#allocation6], %s826_s15, %s826_s15, %s827_s16  }
  0x19   :  { %819 = dma.done.wait [#allocation3], 1024  }
  0x1a   :  { %820 = vsyncadd [#allocation3], 4294966272 }
  0x1b   :  { %821 = dma.done.wait [#allocation6], 1024  }
  0x1c   :  { %822 = vsyncadd [#allocation6], 4294966272  ;;  %v679_v0 = vld [vmem:[#allocation5 + $0x38] sm:$0xff]   ;;  %v680_v1 = vld [vmem:[#allocation5 + $0x30] sm:$0xff]  }
  0x1d   :  { %608 = vmatprep.subr.bf16.mxu0 %v679_v0  ;;  %640 = vmatprep.subr.bf16.mxu1 %v679_v0  ;;  %v681_v2 = vld [vmem:[#allocation5 + $0x28] sm:$0xff]   ;;  %v687_v3 = vld [vmem:[#allocation2] sm:$0xff]   ;;  %v683_v5 = vld [vmem:[#allocation5 + $0x18] sm:$0xff]  }
  0x1e   :  { %609 = vmatpush3.bf16.xpose.msra.mxu0 %v679_v0  ;;  %641 = vmatpush3.bf16.xpose.msra.mxu1 %v679_v0  ;;  %v682_v4 = vld [vmem:[#allocation5 + $0x20] sm:$0xff]   ;;  %v684_v6 = vld [vmem:[#allocation5 + $0x10] sm:$0xff]   ;;  %v685_v7 = vld [vmem:[#allocation5 + $0x8] sm:$0xff]  }
  0x1f   :  { %610 = vmatprep.subr.bf16.mxu0 %v680_v1  ;;  %642 = vmatprep.subr.bf16.mxu1 %v680_v1  ;;  %v686_v8 = vld [vmem:[#allocation5] sm:$0xff]   ;;  %v688_v9 = vld [vmem:[#allocation2 + $0x8] sm:$0xff]   ;;  %v689_v10 = vld [vmem:[#allocation2 + $0x10] sm:$0xff]  }
  0x20   :  { %624 = vmatprep.mubr.bf16.mxu0 %v687_v3  ;;  %v690_v11 = vld [vmem:[#allocation2 + $0x18] sm:$0xff]   ;;  %v691_v12 = vld [vmem:[#allocation2 + $0x20] sm:$0xff]   ;;  %v692_v13 = vld [vmem:[#allocation2 + $0x28] sm:$0xff]  }
  0x21   :  { %v693_v14 = vld [vmem:[#allocation2 + $0x30] sm:$0xff]   ;;  %v694_v15 = vld [vmem:[#allocation2 + $0x38] sm:$0xff]   ;;  %v861_v19 = vld [vmem:[%s992_s2] ss:$0 sm:$0xff]  ;;  %s829_s2 = smov [#allocation7]  }
  0x22   :  { %s546_s24 = sshll.u32 %s829_s2, 4  ;;  %s547_s24 = int_to_ptr.vmem [resolvable:$true] %s546_s24 }
  0x23   :  { %s799_s25 = scalar_lea.vmem %s547_s24, 2048  ;;  %p804_p11 = scmp.lt.s32.totalorder %s547_s24, %s547_s24 }
  0x24   :  { %p800_p10 = scmp.ne.s32.totalorder %s547_s24, %s799_s25  ;;  %p805_p12 = scmp.lt.s32.totalorder %s799_s25, %s799_s25 }
  0x26   :  { %611 = vmatpush3.bf16.xpose.msra.mxu0 %v680_v1  ;;  %643 = vmatpush3.bf16.xpose.msra.mxu1 %v680_v1  ;;  %p806_p13 = por %p805_p12, %p804_p11 }
  0x27   :  { %612 = vmatprep.subr.bf16.mxu0 %v681_v2  ;;  %644 = vmatprep.subr.bf16.mxu1 %v681_v2 }
  0x28   :  { %p807_p0 = pnand %p806_p13, %p800_p10 }
  0x2e   :  { %613 = vmatpush3.bf16.xpose.msra.mxu0 %v681_v2  ;;  %645 = vmatpush3.bf16.xpose.msra.mxu1 %v681_v2 }
  0x2f   :  { %614 = vmatprep.subr.bf16.mxu0 %v682_v4  ;;  %646 = vmatprep.subr.bf16.mxu1 %v682_v4 }
  0x36   :  { %615 = vmatpush3.bf16.xpose.msra.mxu0 %v682_v4  ;;  %647 = vmatpush3.bf16.xpose.msra.mxu1 %v682_v4 }
  0x37   :  { %616 = vmatprep.subr.bf16.mxu0 %v683_v5  ;;  %648 = vmatprep.subr.bf16.mxu1 %v683_v5 }
  0x3e   :  { %617 = vmatpush3.bf16.xpose.msra.mxu0 %v683_v5  ;;  %649 = vmatpush3.bf16.xpose.msra.mxu1 %v683_v5 }
  0x3f   :  { %618 = vmatprep.subr.bf16.mxu0 %v684_v6  ;;  %650 = vmatprep.subr.bf16.mxu1 %v684_v6 }
  0x46   :  { %619 = vmatpush3.bf16.xpose.msra.mxu0 %v684_v6  ;;  %651 = vmatpush3.bf16.xpose.msra.mxu1 %v684_v6 }
  0x47   :  { %620 = vmatprep.subr.bf16.mxu0 %v685_v7  ;;  %652 = vmatprep.subr.bf16.mxu1 %v685_v7 }
  0x4e   :  { %621 = vmatpush3.bf16.xpose.msra.mxu0 %v685_v7  ;;  %653 = vmatpush3.bf16.xpose.msra.mxu1 %v685_v7 }
  0x4f   :  { %622 = vmatprep.subr.bf16.mxu0 %v686_v8  ;;  %654 = vmatprep.subr.bf16.mxu1 %v686_v8 }
  0x56   :  { %623 = vmatpush3.bf16.xpose.msra.mxu0 %v686_v8  ;;  %655 = vmatpush3.bf16.xpose.msra.mxu1 %v686_v8 }
  0x5d   :  { %625 = vmatmul.mubr.bf16.vlgmr.msra.gmra.mxu0 %v688_v9 }
  0x5e   :  { %628 = vmatprep.mubr.bf16.mxu0 %v689_v10 }
  0x65   :  { %629 = vmatmul.mubr.bf16.gmra.mxu0 %v690_v11 }
  0x66   :  { %632 = vmatprep.mubr.bf16.mxu0 %v691_v12 }
  0x6d   :  { %633 = vmatmul.mubr.bf16.gmra.mxu0 %v692_v13 }
  0x6e   :  { %636 = vmatprep.mubr.bf16.mxu0 %v693_v14 }
  0x75   :  { %637 = vmatmul.mubr.bf16.gmra.mxu0 %v694_v15 }
 0x11d   :  { %v626_v16 = vpop.f32.mrf.mxu0 }
 0x11e   :  { %v222_v24 = vadd.f32 %v626_v16, %v861_v19 }
 0x11f   :  { %v213_v17 = vpop.f32.mrf.mxu0 }
 0x120   :  { %v214_v22 = vadd.f32 %v861_v19, %v213_v17 }
 0x121   :  { %v627_v18 = vpop.f32.mrf.mxu0 }
 0x122   :  { %v225_v20 = vadd.f32 %v627_v18, %v861_v19 }
 0x123   :  { %v216_v21 = vpop.f32.mrf.mxu0 }
 0x124   :  { %v217_v23 = vadd.f32 %v861_v19, %v216_v21  ;;  %v277_v27 = vpack.c.bf16 %v225_v20, %v222_v24 }
 0x125   :  { %v630_v25 = vpop.f32.mrf.mxu0 }
 0x126   :  { %v276_v26 = vpack.c.bf16 %v217_v23, %v214_v22  ;;  %v238_v34 = vadd.f32 %v630_v25, %v861_v19 }
 0x127   :  { %v229_v28 = vpop.f32.mrf.mxu0 }
 0x128   :  { %656 = vmatprep.mubr.bf16.mxu1 %v276_v26  ;;  %v230_v32 = vadd.f32 %v861_v19, %v229_v28 }
 0x129   :  { %v631_v29 = vpop.f32.mrf.mxu0  ;;  %657 = vmatmul.mubr.bf16.vlgmr.msra.gmra.mxu1 %v277_v27 }
 0x12a   :  { %v241_v30 = vadd.f32 %v631_v29, %v861_v19 }
 0x12b   :  { %v232_v31 = vpop.f32.mrf.mxu0 }
 0x12c   :  { %v233_v33 = vadd.f32 %v861_v19, %v232_v31  ;;  %v279_v37 = vpack.c.bf16 %v241_v30, %v238_v34 }
 0x12d   :  { %v634_v35 = vpop.f32.mrf.mxu0 }
 0x12e   :  { %v278_v36 = vpack.c.bf16 %v233_v33, %v230_v32  ;;  %v254_v44 = vadd.f32 %v634_v35, %v861_v19 }
 0x12f   :  { %v245_v38 = vpop.f32.mrf.mxu0 }
 0x130   :  { %660 = vmatprep.mubr.bf16.mxu1 %v278_v36  ;;  %v246_v42 = vadd.f32 %v861_v19, %v245_v38 }
 0x131   :  { %v635_v39 = vpop.f32.mrf.mxu0  ;;  %661 = vmatmul.mubr.bf16.gmra.mxu1 %v279_v37 }
 0x132   :  { %v257_v40 = vadd.f32 %v635_v39, %v861_v19 }
 0x133   :  { %v248_v41 = vpop.f32.mrf.mxu0 }
 0x134   :  { %v249_v43 = vadd.f32 %v861_v19, %v248_v41  ;;  %v281_v47 = vpack.c.bf16 %v257_v40, %v254_v44 }
 0x135   :  { %v638_v45 = vpop.f32.mrf.mxu0 }
 0x136   :  { %v280_v46 = vpack.c.bf16 %v249_v43, %v246_v42  ;;  %v270_v54 = vadd.f32 %v638_v45, %v861_v19 }
 0x137   :  { %v261_v48 = vpop.f32.mrf.mxu0 }
 0x138   :  { %664 = vmatprep.mubr.bf16.mxu1 %v280_v46  ;;  %v262_v52 = vadd.f32 %v861_v19, %v261_v48 }
 0x139   :  { %v639_v49 = vpop.f32.mrf.mxu0  ;;  %665 = vmatmul.mubr.bf16.gmra.mxu1 %v281_v47 }
 0x13a   :  { %v273_v50 = vadd.f32 %v639_v49, %v861_v19 }
 0x13b   :  { %v264_v51 = vpop.f32.mrf.mxu0 }
 0x13c   :  { %v265_v53 = vadd.f32 %v861_v19, %v264_v51  ;;  %v283_v56 = vpack.c.bf16 %v273_v50, %v270_v54 }
 0x13e   :  { %v282_v55 = vpack.c.bf16 %v265_v53, %v262_v52 }
 0x140   :  { %668 = vmatprep.mubr.bf16.mxu1 %v282_v55 }
 0x141   :  { %669 = vmatmul.mubr.bf16.gmra.mxu1 %v283_v56 }
 0x1e9   :  { %v658_v57 = vpop.f32.mrf.mxu1 }
 0x1ea   :  { %v327_v58 = vadd.f32 %v658_v57, %v861_v19 }
 0x1eb   :  { %v318_v59 = vpop.f32.mrf.mxu1 }
 0x1ec   :  { %v319_v60 = vadd.f32 %v861_v19, %v318_v59  ;;  %385 = vmax.xlane.f32.xlu1 %v327_v58 }
 0x1ed   :  { %v659_v61 = vpop.f32.mrf.mxu1 }
 0x1ee   :  { %v330_v62 = vadd.f32 %v659_v61, %v861_v19  ;;  %381 = vmax.xlane.f32.xlu0 %v319_v60 }
 0x1ef   :  { %v321_v63 = vpop.f32.mrf.mxu1 }
 0x1f0   :  { %v322_v0 = vadd.f32 %v861_v19, %v321_v63  ;;  %387 = vmax.xlane.f32.xlu1 %v330_v62 }
 0x1f1   :  { %v662_v1 = vpop.f32.mrf.mxu1 }
 0x1f2   :  { %383 = vmax.xlane.f32.xlu0 %v322_v0  ;;  %v343_v3 = vadd.f32 %v662_v1, %v861_v19 }
 0x1f3   :  { %v334_v2 = vpop.f32.mrf.mxu1 }
 0x1f4   :  { %v335_v7 = vadd.f32 %v861_v19, %v334_v2 }
 0x1f5   :  { %v663_v4 = vpop.f32.mrf.mxu1 }
 0x1f6   :  { %v346_v5 = vadd.f32 %v663_v4, %v861_v19  ;;  %393 = vmax.xlane.f32.xlu0 %v343_v3 }
 0x1f7   :  { %v337_v6 = vpop.f32.mrf.mxu1 }
 0x1f8   :  { %395 = vmax.xlane.f32.xlu1 %v346_v5  ;;  %v338_v9 = vadd.f32 %v861_v19, %v337_v6 }
 0x1f9   :  { %v666_v8 = vpop.f32.mrf.mxu1 }
 0x1fa   :  { %389 = vmax.xlane.f32.xlu0 %v335_v7  ;;  %v359_v11 = vadd.f32 %v666_v8, %v861_v19 }
 0x1fb   :  { %v350_v10 = vpop.f32.mrf.mxu1 }
 0x1fc   :  { %391 = vmax.xlane.f32.xlu1 %v338_v9  ;;  %v892_v15 = vadd.f32 %v861_v19, %v350_v10 }
 0x1fd   :  { %v667_v12 = vpop.f32.mrf.mxu1 }
 0x1fe   :  { %v889_v13 = vadd.f32 %v667_v12, %v861_v19  ;;  %401 = vmax.xlane.f32.xlu0 %v359_v11 }
 0x1ff   :  { %v353_v14 = vpop.f32.mrf.mxu1 }
 0x200   :  { %403 = vmax.xlane.f32.xlu1 %v889_v13  ;;  %v896_v17 = vadd.f32 %v861_v19, %v353_v14 }
 0x201   :  { %v670_v16 = vpop.f32.mrf.mxu1 }
 0x202   :  { %397 = vmax.xlane.f32.xlu0 %v892_v15  ;;  %v905_v23 = vadd.f32 %v670_v16, %v861_v19 }
 0x203   :  { %v366_v18 = vpop.f32.mrf.mxu1 }
 0x204   :  { %v900_v20 = vadd.f32 %v861_v19, %v366_v18  ;;  %399 = vmax.xlane.f32.xlu1 %v896_v17 }
 0x205   :  { %v671_v21 = vpop.f32.mrf.mxu1 }
 0x206   :  { %405 = vmax.xlane.f32.xlu0 %v900_v20  ;;  %v913_v25 = vadd.f32 %v671_v21, %v861_v19 }
 0x207   :  { %v369_v22 = vpop.f32.mrf.mxu1 }
 0x208   :  { %v908_v24 = vadd.f32 %v861_v19, %v369_v22 }
 0x20a   :  { %407 = vmax.xlane.f32.xlu1 %v908_v24  ;;  %409 = vmax.xlane.f32.xlu0 %v905_v23 }
 0x20e   :  { %411 = vmax.xlane.f32.xlu1 %v913_v25 }
 0x275   :  { %v386_v26 = vpop.xlane.xlu1 %385 }
 0x276   :  { %v415_v27 = vsub.f32 %v327_v58, %v386_v26 }
 0x277   :  { %v382_v28 = vpop.xlane.xlu0 %381 }
 0x278   :  { %v433_v29 = vmul.f32 1.442695, %v415_v27  ;;  %v413_v30 = vsub.f32 %v319_v60, %v382_v28 }
 0x279   :  { %v388_v31 = vpop.xlane.xlu1 %387 }
 0x27a   :  { %695 = vpow2.f32 %v433_v29  ;;  %v429_v32 = vmul.f32 1.442695, %v413_v30  ;;  %v416_v33 = vsub.f32 %v330_v62, %v388_v31 }
 0x27b   :  { %v384_v34 = vpop.xlane.xlu0 %383 }
 0x27c   :  { %v435_v35 = vmul.f32 1.442695, %v416_v33  ;;  %v414_v36 = vsub.f32 %v322_v0, %v384_v34  ;;  %697 = vpow2.f32 %v429_v32 }
 0x27e   :  { %699 = vpow2.f32 %v435_v35  ;;  %v431_v37 = vmul.f32 1.442695, %v414_v36 }
 0x27f   :  { %v394_v38 = vpop.xlane.xlu0 %393 }
 0x280   :  { %v419_v19 = vsub.f32 %v343_v3, %v394_v38  ;;  %701 = vpow2.f32 %v431_v37 }
 0x281   :  { %v396_v39 = vpop.xlane.xlu1 %395 }
 0x282   :  { %v441_v40 = vmul.f32 1.442695, %v419_v19  ;;  %v420_v41 = vsub.f32 %v346_v5, %v396_v39 }
 0x283   :  { %v390_v42 = vpop.xlane.xlu0 %389 }
 0x284   :  { %703 = vpow2.f32 %v441_v40  ;;  %v443_v43 = vmul.f32 1.442695, %v420_v41  ;;  %v417_v44 = vsub.f32 %v335_v7, %v390_v42 }
 0x285   :  { %v392_v45 = vpop.xlane.xlu1 %391 }
 0x286   :  { %705 = vpow2.f32 %v443_v43  ;;  %v437_v46 = vmul.f32 1.442695, %v417_v44  ;;  %v418_v47 = vsub.f32 %v338_v9, %v392_v45 }
 0x287   :  { %v916_v48 = vpop.eup %695  ;;  %v402_v49 = vpop.xlane.xlu0 %401 }
 0x288   :  { %707 = vpow2.f32 %v437_v46  ;;  %v439_v50 = vmul.f32 1.442695, %v418_v47  ;;  %v423_v51 = vsub.f32 %v359_v11, %v402_v49  ;;  %465 = vadd.xlane.f32.xlu0 %v916_v48 }
 0x289   :  { %v404_v52 = vpop.xlane.xlu1 %403  ;;  %v919_v53 = vpop.eup %697 }
 0x28a   :  { %709 = vpow2.f32 %v439_v50  ;;  %v449_v54 = vmul.f32 1.442695, %v423_v51  ;;  %v424_v55 = vsub.f32 %v889_v13, %v404_v52 }
 0x28b   :  { %v922_v56 = vpop.eup %699  ;;  %v398_v57 = vpop.xlane.xlu0 %397 }
 0x28c   :  { %711 = vpow2.f32 %v449_v54  ;;  %v451_v58 = vmul.f32 1.442695, %v424_v55  ;;  %v421_v59 = vsub.f32 %v892_v15, %v398_v57  ;;  %467 = vadd.xlane.f32.xlu1 %v922_v56  ;;  %461 = vadd.xlane.f32.xlu0 %v919_v53 }
 0x28d   :  { %v400_v60 = vpop.xlane.xlu1 %399  ;;  %v928_v63 = vpop.eup %701 }
 0x28e   :  { %713 = vpow2.f32 %v451_v58  ;;  %v445_v61 = vmul.f32 1.442695, %v421_v59  ;;  %v422_v62 = vsub.f32 %v896_v17, %v400_v60 }
 0x28f   :  { %v406_v0 = vpop.xlane.xlu0 %405 }
 0x290   :  { %715 = vpow2.f32 %v445_v61  ;;  %v447_v1 = vmul.f32 1.442695, %v422_v62  ;;  %v425_v2 = vsub.f32 %v900_v20, %v406_v0  ;;  %463 = vadd.xlane.f32.xlu1 %v928_v63 }
 0x291   :  { %v932_v3 = vpop.eup %703 }
 0x292   :  { %717 = vpow2.f32 %v447_v1  ;;  %v453_v4 = vmul.f32 1.442695, %v425_v2  ;;  %473 = vadd.xlane.f32.xlu0 %v932_v3 }
 0x293   :  { %v935_v5 = vpop.eup %705  ;;  %v408_v6 = vpop.xlane.xlu1 %407 }
 0x294   :  { %v410_v7 = vpop.xlane.xlu0 %409  ;;  %719 = vpow2.f32 %v453_v4  ;;  %v426_v8 = vsub.f32 %v908_v24, %v408_v6  ;;  %475 = vadd.xlane.f32.xlu1 %v935_v5 }
 0x295   :  { %v427_v9 = vsub.f32 %v905_v23, %v410_v7  ;;  %v940_v10 = vpop.eup %707 }
 0x296   :  { %v455_v11 = vmul.f32 1.442695, %v426_v8  ;;  %469 = vadd.xlane.f32.xlu0 %v940_v10 }
 0x297   :  { %v457_v12 = vmul.f32 1.442695, %v427_v9  ;;  %v943_v13 = vpop.eup %709  ;;  %v412_v14 = vpop.xlane.xlu1 %411 }
 0x298   :  { %721 = vpow2.f32 %v455_v11  ;;  %v428_v15 = vsub.f32 %v913_v25, %v412_v14  ;;  %471 = vadd.xlane.f32.xlu1 %v943_v13 }
 0x299   :  { %v947_v16 = vpop.eup %711  ;;  %723 = vpow2.f32 %v457_v12 }
 0x29a   :  { %v459_v17 = vmul.f32 1.442695, %v428_v15  ;;  %481 = vadd.xlane.f32.xlu0 %v947_v16 }
 0x29b   :  { %v950_v18 = vpop.eup %713 }
 0x29c   :  { %725 = vpow2.f32 %v459_v17  ;;  %483 = vadd.xlane.f32.xlu1 %v950_v18 }
 0x29d   :  { %v953_v20 = vpop.eup %715 }
 0x29e   :  { %477 = vadd.xlane.f32.xlu0 %v953_v20 }
 0x29f   :  { %v956_v21 = vpop.eup %717 }
 0x2a0   :  { %479 = vadd.xlane.f32.xlu1 %v956_v21 }
 0x2a1   :  { %v959_v22 = vpop.eup %719 }
 0x2a2   :  { %485 = vadd.xlane.f32.xlu0 %v959_v22 }
 0x2a5   :  { %v962_v23 = vpop.eup %721 }
 0x2a6   :  { %v964_v24 = vpop.eup %723  ;;  %487 = vadd.xlane.f32.xlu1 %v962_v23 }
 0x2a7   :  { %489 = vadd.xlane.f32.xlu0 %v964_v24 }
 0x2a9   :  { %v968_v25 = vpop.eup %725 }
 0x2aa   :  { %491 = vadd.xlane.f32.xlu1 %v968_v25 }
 0x311   :  { %v466_v26 = vpop.xlane.xlu0 %465 }
 0x312   :  { %727 = vrcp.f32 %v466_v26 }
 0x315   :  { %v468_v27 = vpop.xlane.xlu1 %467  ;;  %v462_v28 = vpop.xlane.xlu0 %461 }
 0x316   :  { %729 = vrcp.f32 %v468_v27 }
 0x317   :  { %731 = vrcp.f32 %v462_v28 }
 0x319   :  { %v464_v29 = vpop.xlane.xlu1 %463 }
 0x31a   :  { %733 = vrcp.f32 %v464_v29 }
 0x31b   :  { %v474_v30 = vpop.xlane.xlu0 %473 }
 0x31c   :  { %735 = vrcp.f32 %v474_v30 }
 0x31d   :  { %v476_v31 = vpop.xlane.xlu1 %475 }
 0x31e   :  { %737 = vrcp.f32 %v476_v31 }
 0x31f   :  { %v728_v32 = vpop.eup %727  ;;  %v470_v33 = vpop.xlane.xlu0 %469 }
 0x320   :  { %v511_v34 = vmul.f32 %v728_v32, %v916_v48  ;;  %739 = vrcp.f32 %v470_v33 }
 0x321   :  { %v472_v35 = vpop.xlane.xlu1 %471 }
 0x322   :  { %527 = vst [vmem:[#allocation7 + $0x10] sm:$0xff] %v511_v34  ;;  %741 = vrcp.f32 %v472_v35 }
 0x323   :  { %v730_v36 = vpop.eup %729  ;;  %v482_v37 = vpop.xlane.xlu0 %481 }
 0x324   :  { %v732_v38 = vpop.eup %731  ;;  %v512_v19 = vmul.f32 %v730_v36, %v922_v56  ;;  %743 = vrcp.f32 %v482_v37 }
 0x325   :  { %v509_v39 = vmul.f32 %v732_v38, %v919_v53  ;;  %v484_v40 = vpop.xlane.xlu1 %483 }
 0x326   :  { %528 = vst [vmem:[#allocation7 + $0x18] sm:$0xff] %v512_v19  ;;  %745 = vrcp.f32 %v484_v40 }
 0x327   :  { %v734_v41 = vpop.eup %733  ;;  %525 = vst [vmem:[#allocation7] sm:$0xff] %v509_v39  ;;  %v478_v42 = vpop.xlane.xlu0 %477 }
 0x328   :  { %v510_v43 = vmul.f32 %v734_v41, %v928_v63  ;;  %747 = vrcp.f32 %v478_v42 }
 0x329   :  { %v736_v44 = vpop.eup %735  ;;  %v480_v45 = vpop.xlane.xlu1 %479 }
 0x32a   :  { %526 = vst [vmem:[#allocation7 + $0x8] sm:$0xff] %v510_v43  ;;  %v515_v46 = vmul.f32 %v736_v44, %v932_v3  ;;  %749 = vrcp.f32 %v480_v45 }
 0x32b   :  { %v738_v47 = vpop.eup %737  ;;  %v486_v48 = vpop.xlane.xlu0 %485 }
 0x32c   :  { %531 = vst [vmem:[#allocation7 + $0x30] sm:$0xff] %v515_v46  ;;  %v516_v49 = vmul.f32 %v738_v47, %v935_v5  ;;  %751 = vrcp.f32 %v486_v48 }
 0x32d   :  { %v740_v50 = vpop.eup %739 }
 0x32e   :  { %532 = vst [vmem:[#allocation7 + $0x38] sm:$0xff] %v516_v49  ;;  %v513_v51 = vmul.f32 %v740_v50, %v940_v10 }
 0x32f   :  { %v742_v52 = vpop.eup %741  ;;  %v488_v53 = vpop.xlane.xlu1 %487 }
 0x330   :  { %529 = vst [vmem:[#allocation7 + $0x20] sm:$0xff] %v513_v51  ;;  %v514_v54 = vmul.f32 %v742_v52, %v943_v13  ;;  %753 = vrcp.f32 %v488_v53  ;;  %v490_v55 = vpop.xlane.xlu0 %489 }
 0x331   :  { %v744_v56 = vpop.eup %743  ;;  %755 = vrcp.f32 %v490_v55 }
 0x332   :  { %530 = vst [vmem:[#allocation7 + $0x28] sm:$0xff] %v514_v54  ;;  %v519_v57 = vmul.f32 %v744_v56, %v947_v16 }
 0x333   :  { %v746_v58 = vpop.eup %745  ;;  %v492_v59 = vpop.xlane.xlu1 %491 }
 0x334   :  { %535 = vst [vmem:[#allocation7 + $0x50] sm:$0xff] %v519_v57  ;;  %v520_v60 = vmul.f32 %v746_v58, %v950_v18  ;;  %757 = vrcp.f32 %v492_v59 }
 0x335   :  { %v748_v61 = vpop.eup %747 }
 0x336   :  { %536 = vst [vmem:[#allocation7 + $0x58] sm:$0xff] %v520_v60  ;;  %v517_v62 = vmul.f32 %v748_v61, %v953_v20 }
 0x337   :  { %v750_v63 = vpop.eup %749 }
 0x338   :  { %533 = vst [vmem:[#allocation7 + $0x40] sm:$0xff] %v517_v62  ;;  %v518_v0 = vmul.f32 %v750_v63, %v956_v21 }
 0x339   :  { %v752_v1 = vpop.eup %751 }
 0x33a   :  { %534 = vst [vmem:[#allocation7 + $0x48] sm:$0xff] %v518_v0  ;;  %v521_v2 = vmul.f32 %v752_v1, %v959_v22 }
 0x33c   :  { %537 = vst [vmem:[#allocation7 + $0x60] sm:$0xff] %v521_v2 }
 0x33d   :  { %v754_v3 = vpop.eup %753 }
 0x33e   :  { %v756_v4 = vpop.eup %755  ;;  %v522_v5 = vmul.f32 %v754_v3, %v962_v23 }
 0x33f   :  { %v523_v6 = vmul.f32 %v756_v4, %v964_v24 }
 0x340   :  { %538 = vst [vmem:[#allocation7 + $0x68] sm:$0xff] %v522_v5 }
 0x341   :  { %v758_v7 = vpop.eup %757  ;;  %539 = vst [vmem:[#allocation7 + $0x70] sm:$0xff] %v523_v6 }
 0x342   :  { %v524_v8 = vmul.f32 %v758_v7, %v968_v25 }
 0x344   :  { %540 = vst [vmem:[#allocation7 + $0x78] sm:$0xff] %v524_v8 }
 0x345   :  { %810 = shalt.err (!%p807_p0)
}
 0x346   :  { %s830_s26 = smov 128   ;;  %s831_s27 = smov 8  }
 0x347   :  { %552 = dma.vmem_to_hbm [thread:$0]  %s547_s24, 2048, %s993_s3, [#allocation4], %s830_s26, %s830_s26, %s831_s27  }
 0x348   :  { %823 = dma.done.wait [#allocation4], 2048  }
 0x349   :  { %824 = vsyncadd [#allocation4], 4294965248 }
 0x34a   :  { %556 = vsyncpa [#allocation3], 1 }
 0x34b   :  { %557 = vsyncpa [#allocation6], 1 }
 0x34c   :  { %558 = vsyncpa [#allocation4], 1 }

</bundles_post_ra>
